<compile_context>
chip_gen: v5e
topology: v5e:2x2
jax: 0.10.0
libtpu: 0.0.40
codegen_flags: <defaults>
</compile_context>

<pallas_src>
import functools

import jax
import jax.numpy as jnp
from jax.experimental import pallas as pl
from jax.experimental.pallas import tpu as pltpu


# ----------------------------------------------------------------------------
# Pallas kernel: whole fused MLP hot path, VMEM-resident per batch tile.
# ----------------------------------------------------------------------------
def mlp_policy_kernel(x_ref, w1_ref, b1_ref, w2_ref, b2_ref, w3_ref, b3_ref,
                      out_ref):
    x = x_ref[...]                                                   # (bm, ni)

    # layer 1 (critic lanes 0:64, actor lanes 64:128)
    h1 = jnp.tanh(
        jnp.dot(x, w1_ref[...], preferred_element_type=jnp.float32) + b1_ref[...]
    )                                                                # (bm, 128)

    # layer 2 (block-diagonal: critic/actor stay in their lane halves)
    h2 = jnp.tanh(
        jnp.dot(h1, w2_ref[...], preferred_element_type=jnp.float32) + b2_ref[...]
    )                                                                # (bm, 128)

    # layer 3: one matmul produces the lane-dense output slab:
    #   lanes 0:63  = actor (identity copy of h2[:, 64:128], exact in f32)
    #   lane  64    = value (h2[:, 0:64] @ wv3 + bv3)
    out_ref[...] = (
        jnp.dot(h2, w3_ref[...], preferred_element_type=jnp.float32) + b3_ref[...]
    )


# ----------------------------------------------------------------------------
# JAX wrapper.
# ----------------------------------------------------------------------------
def mlp_policy_forward(inputs, states, masks, packed_params, *, block_rows=256):
    """inputs: (B, num_inputs) f32. Returns (value (B,1), x (B,64), states)."""
    w1, b1, w2, b2, w3, b3 = packed_params
    B, num_inputs = inputs.shape

    # Batch tile: up to `block_rows` rows per grid step, padded to multiple of 8.
    bm = block_rows if B >= block_rows else max(8, ((B + 7) // 8) * 8)
    n_tiles = pl.cdiv(B, bm)
    Bp = n_tiles * bm
    if Bp != B:
        inputs = jnp.pad(inputs, ((0, Bp - B), (0, 0)))

    flops = 2 * Bp * (num_inputs * 128 + 128 * 128 + 128 * 128)
    transcendentals = 2 * Bp * 128
    bytes_accessed = 4 * (Bp * num_inputs + Bp * 128
                          + num_inputs * 128 + 2 * 128 * 128 + 3 * 128)

    out = pl.pallas_call(
        mlp_policy_kernel,
        out_shape=jax.ShapeDtypeStruct((Bp, 128), jnp.float32),
        grid=(n_tiles,),
        in_specs=[
            pl.BlockSpec((bm, num_inputs), lambda i: (i, 0)),   # activations
            pl.BlockSpec((num_inputs, 128), lambda i: (0, 0)),  # W1  (replicated)
            pl.BlockSpec((1, 128), lambda i: (0, 0)),           # b1
            pl.BlockSpec((128, 128), lambda i: (0, 0)),         # W2
            pl.BlockSpec((1, 128), lambda i: (0, 0)),           # b2
            pl.BlockSpec((128, 128), lambda i: (0, 0)),         # W3
            pl.BlockSpec((1, 128), lambda i: (0, 0)),           # b3
        ],
        out_specs=pl.BlockSpec((bm, 128), lambda i: (i, 0)),
        compiler_params=pltpu.CompilerParams(
            dimension_semantics=("parallel",)),                 # v7x: 2 TCs
        cost_estimate=pl.CostEstimate(
            flops=flops,
            transcendentals=transcendentals,
            bytes_accessed=bytes_accessed),
    )(inputs, w1, b1, w2, b2, w3, b3)

    actor = out[:B, 0:64]
    value = out[:B, 64:65]
    # masks is unused by MLPPolicy.forward; states is returned unchanged.
    return value, actor, states


# ----------------------------------------------------------------------------
# Parameter init replicating weights_init_mlp:
#   W ~ N(0, 1), each row scaled by 1/||row||_2 (over the input dim), bias = 0.
#   Stored pre-transposed as (in, out).
# ----------------------------------------------------------------------------
def init_linear(key, in_features, out_features):
    w = jax.random.normal(key, (out_features, in_features), dtype=jnp.float32)
    w = w / jnp.sqrt(jnp.sum(w * w, axis=1, keepdims=True))
    b = jnp.zeros((1, out_features), dtype=jnp.float32)
    return w.T, b  # (in, out), (1, out)


def init_params(key, num_inputs):
    k1, k2, k3, k4, k5 = jax.random.split(key, 5)
    return (
        init_linear(k1, num_inputs, 64),  # v_fc1
        init_linear(k2, 64, 64),          # v_fc2
        init_linear(k3, 64, 1),           # v_fc3
        init_linear(k4, num_inputs, 64),  # a_fc1
        init_linear(k5, 64, 64),          # a_fc2
    )
    # TODO(synk): self.dist (Categorical/DiagGaussian head) is constructed in
    # __init__ but not used in forward(); it is omitted here.


def pack_params(params):
    """Fuse the 5 Linear layers into 3 lane-dense (…,128) weight matrices."""
    (wv1, bv1), (wv2, bv2), (wv3, bv3), (wa1, ba1), (wa2, ba2) = params

    w1 = jnp.concatenate([wv1, wa1], axis=1)               # (ni, 128)
    b1 = jnp.concatenate([bv1, ba1], axis=1)                # (1, 128)

    w2 = jnp.zeros((128, 128), dtype=jnp.float32)
    w2 = w2.at[:64, :64].set(wv2).at[64:, 64:].set(wa2)     # block-diagonal
    b2 = jnp.concatenate([bv2, ba2], axis=1)                # (1, 128)

    w3 = jnp.zeros((128, 128), dtype=jnp.float32)
    w3 = w3.at[:64, 64:65].set(wv3)                         # value -> lane 64
    w3 = w3.at[64:, :64].set(jnp.eye(64, dtype=jnp.float32))  # actor -> lanes 0:63
    b3 = jnp.zeros((1, 128), dtype=jnp.float32).at[0, 64].set(bv3[0, 0])

    # Note: weights are kept f32 (v5e has no bf16 VPU/EUP path and the workload
    # is latency-, not bandwidth-, bound at these sizes). bf16 weights are an
    # optional extra win on v6e/v7x for large batches.
    return w1, b1, w2, b2, w3, b3


def reference_forward(inputs, states, params):
    """Pure-JAX reference (unfused) for correctness checking."""
    (wv1, bv1), (wv2, bv2), (wv3, bv3), (wa1, ba1), (wa2, ba2) = params
    hv = jnp.tanh(inputs @ wv1 + bv1)
    hv = jnp.tanh(hv @ wv2 + bv2)
    value = hv @ wv3 + bv3
    ha = jnp.tanh(inputs @ wa1 + ba1)
    actor = jnp.tanh(ha @ wa2 + ba2)
    return value, actor, states


if __name__ == "__main__":
    key = jax.random.PRNGKey(0)
    k_in, k_params = jax.random.split(key)

    B, NUM_INPUTS = 8, 32
    inputs = jax.random.normal(k_in, (B, NUM_INPUTS), dtype=jnp.float32)
    states = jnp.zeros((B, 1), dtype=jnp.float32)   # state_size == 1
    masks = jnp.ones((B, 1), dtype=jnp.float32)

    params = init_params(k_params, NUM_INPUTS)
    packed = pack_params(params)

    fwd = jax.jit(functools.partial(mlp_policy_forward, block_rows=256))
    value, actor, states_out = fwd(inputs, states, masks, packed)
    jax.block_until_ready((value, actor, states_out))

    ref_value, ref_actor, _ = reference_forward(inputs, states, params)
    assert value.shape == (B, 1) and actor.shape == (B, 64)
    assert states_out.shape == states.shape
    assert jnp.allclose(value, ref_value, atol=1e-5, rtol=1e-5)
    assert jnp.allclose(actor, ref_actor, atol=1e-5, rtol=1e-5)

    print("KERNEL_OK")
</pallas_src>

<mosaic_0001>
module attributes {stable_mosaic.version = 11 : i64} {
  func.func @mlp_policy_kernel(%arg0: i32, %arg1: memref<8x32xf32, #tpu.memory_space<vmem>>, %arg2: memref<32x128xf32, #tpu.memory_space<vmem>>, %arg3: memref<1x128xf32, #tpu.memory_space<vmem>>, %arg4: memref<128x128xf32, #tpu.memory_space<vmem>>, %arg5: memref<1x128xf32, #tpu.memory_space<vmem>>, %arg6: memref<128x128xf32, #tpu.memory_space<vmem>>, %arg7: memref<1x128xf32, #tpu.memory_space<vmem>>, %arg8: memref<8x128xf32, #tpu.memory_space<vmem>>) attributes {dimension_semantics = [#tpu.dimension_semantics<parallel>], iteration_bounds = array<i64: 1>, scalar_prefetch = 0 : i64, scratch_operands = 0 : i64, tpu.core_type = #tpu.core_type<tc>, window_params = [{transform_indices = @transform_0, window_bounds = array<i64: 8, 32>}, {pipeline_mode = #tpu.pipeline_mode<synchronous>, transform_indices = @transform_1, window_bounds = array<i64: 32, 128>}, {pipeline_mode = #tpu.pipeline_mode<synchronous>, transform_indices = @transform_2, window_bounds = array<i64: 1, 128>}, {pipeline_mode = #tpu.pipeline_mode<synchronous>, transform_indices = @transform_3, window_bounds = array<i64: 128, 128>}, {pipeline_mode = #tpu.pipeline_mode<synchronous>, transform_indices = @transform_4, window_bounds = array<i64: 1, 128>}, {pipeline_mode = #tpu.pipeline_mode<synchronous>, transform_indices = @transform_5, window_bounds = array<i64: 128, 128>}, {pipeline_mode = #tpu.pipeline_mode<synchronous>, transform_indices = @transform_6, window_bounds = array<i64: 1, 128>}, {transform_indices = @transform_7, window_bounds = array<i64: 8, 128>}]} {
    %c0 = arith.constant 0 : index
    %c0_0 = arith.constant 0 : index
    %0 = vector.load %arg1[%c0, %c0_0] : memref<8x32xf32, #tpu.memory_space<vmem>>, vector<8x32xf32>
    %c0_1 = arith.constant 0 : index
    %c0_2 = arith.constant 0 : index
    %1 = vector.load %arg2[%c0_1, %c0_2] : memref<32x128xf32, #tpu.memory_space<vmem>>, vector<32x128xf32>
    %cst = arith.constant dense<0.000000e+00> : vector<8x128xf32>
    %2 = tpu.matmul %0, %1, %cst {dimension_numbers = #tpu.dot_dimension_numbers<[1], [0], [0], [1], [0, 0, 1, 1], [], []>} : vector<8x32xf32>, vector<32x128xf32>, vector<8x128xf32> -> vector<8x128xf32>
    %c0_3 = arith.constant 0 : index
    %c0_4 = arith.constant 0 : index
    %3 = vector.load %arg3[%c0_3, %c0_4] : memref<1x128xf32, #tpu.memory_space<vmem>>, vector<1x128xf32>
    %4 = vector.broadcast %3 : vector<1x128xf32> to vector<8x128xf32>
    %5 = arith.addf %2, %4 : vector<8x128xf32>
    %6 = math.tanh %5 : vector<8x128xf32>
    %c0_5 = arith.constant 0 : index
    %c0_6 = arith.constant 0 : index
    %7 = vector.load %arg4[%c0_5, %c0_6] : memref<128x128xf32, #tpu.memory_space<vmem>>, vector<128x128xf32>
    %cst_7 = arith.constant dense<0.000000e+00> : vector<8x128xf32>
    %8 = tpu.matmul %6, %7, %cst_7 {dimension_numbers = #tpu.dot_dimension_numbers<[1], [0], [0], [1], [0, 0, 1, 1], [], []>} : vector<8x128xf32>, vector<128x128xf32>, vector<8x128xf32> -> vector<8x128xf32>
    %c0_8 = arith.constant 0 : index
    %c0_9 = arith.constant 0 : index
    %9 = vector.load %arg5[%c0_8, %c0_9] : memref<1x128xf32, #tpu.memory_space<vmem>>, vector<1x128xf32>
    %10 = vector.broadcast %9 : vector<1x128xf32> to vector<8x128xf32>
    %11 = arith.addf %8, %10 : vector<8x128xf32>
    %12 = math.tanh %11 : vector<8x128xf32>
    %c0_10 = arith.constant 0 : index
    %c0_11 = arith.constant 0 : index
    %13 = vector.load %arg6[%c0_10, %c0_11] : memref<128x128xf32, #tpu.memory_space<vmem>>, vector<128x128xf32>
    %cst_12 = arith.constant dense<0.000000e+00> : vector<8x128xf32>
    %14 = tpu.matmul %12, %13, %cst_12 {dimension_numbers = #tpu.dot_dimension_numbers<[1], [0], [0], [1], [0, 0, 1, 1], [], []>} : vector<8x128xf32>, vector<128x128xf32>, vector<8x128xf32> -> vector<8x128xf32>
    %c0_13 = arith.constant 0 : index
    %c0_14 = arith.constant 0 : index
    %15 = vector.load %arg7[%c0_13, %c0_14] : memref<1x128xf32, #tpu.memory_space<vmem>>, vector<1x128xf32>
    %16 = vector.broadcast %15 : vector<1x128xf32> to vector<8x128xf32>
    %17 = arith.addf %14, %16 : vector<8x128xf32>
    %c0_15 = arith.constant 0 : index
    %c0_16 = arith.constant 0 : index
    %18 = vector.load %arg8[%c0_15, %c0_16] : memref<8x128xf32, #tpu.memory_space<vmem>>, vector<8x128xf32>
    tpu.vector_store %arg8[%c0_15, %c0_16], %17 {strides = array<i32>} : memref<8x128xf32, #tpu.memory_space<vmem>>, vector<8x128xf32>,
    return
  }
  func.func @transform_0(%arg0: i32) -> (i32, i32) {
    %c0_i32 = arith.constant 0 : i32
    %c0_i32_0 = arith.constant 0 : i32
    return %arg0, %c0_i32 : i32, i32
  }
  func.func @transform_1(%arg0: i32) -> (i32, i32) {
    %c0_i32 = arith.constant 0 : i32
    %c0_i32_0 = arith.constant 0 : i32
    %c0_i32_1 = arith.constant 0 : i32
    return %c0_i32, %c0_i32_0 : i32, i32
  }
  func.func @transform_2(%arg0: i32) -> (i32, i32) {
    %c0_i32 = arith.constant 0 : i32
    %c0_i32_0 = arith.constant 0 : i32
    %c0_i32_1 = arith.constant 0 : i32
    return %c0_i32, %c0_i32_0 : i32, i32
  }
  func.func @transform_3(%arg0: i32) -> (i32, i32) {
    %c0_i32 = arith.constant 0 : i32
    %c0_i32_0 = arith.constant 0 : i32
    %c0_i32_1 = arith.constant 0 : i32
    return %c0_i32, %c0_i32_0 : i32, i32
  }
  func.func @transform_4(%arg0: i32) -> (i32, i32) {
    %c0_i32 = arith.constant 0 : i32
    %c0_i32_0 = arith.constant 0 : i32
    %c0_i32_1 = arith.constant 0 : i32
    return %c0_i32, %c0_i32_0 : i32, i32
  }
  func.func @transform_5(%arg0: i32) -> (i32, i32) {
    %c0_i32 = arith.constant 0 : i32
    %c0_i32_0 = arith.constant 0 : i32
    %c0_i32_1 = arith.constant 0 : i32
    return %c0_i32, %c0_i32_0 : i32, i32
  }
  func.func @transform_6(%arg0: i32) -> (i32, i32) {
    %c0_i32 = arith.constant 0 : i32
    %c0_i32_0 = arith.constant 0 : i32
    %c0_i32_1 = arith.constant 0 : i32
    return %c0_i32, %c0_i32_0 : i32, i32
  }
  func.func @transform_7(%arg0: i32) -> (i32, i32) {
    %c0_i32 = arith.constant 0 : i32
    %c0_i32_0 = arith.constant 0 : i32
    return %arg0, %c0_i32 : i32, i32
  }
}

</mosaic_0001>

<bundles_post_ra>
// kernel: mlp_policy_forward.1
= control target key start
LH: loop header
LB: loop body
LE: loop exit
PB: predicated region body
PF: predicated region fallthrough
CT: control target
= control target key end

     0   :  { %12 = vsyncpa [#allocation3], 0  ;;  %s435_s0 = inlined_call_operand.hbm [shape: f32[8,32], index: 0, kind: input, shape index: {}]   ;;  %s436_s1 = inlined_call_operand.hbm [shape: f32[32,128], index: 1, kind: input, shape index: {}]   ;;  %s437_s2 = inlined_call_operand.vmem [shape: f32[1,128], index: 2, kind: input, shape index: {}]   ;;  %s438_s3 = inlined_call_operand.hbm [shape: f32[128,128], index: 3, kind: input, shape index: {}]   ;;  %s439_s4 = inlined_call_operand.vmem [shape: f32[1,128], index: 4, kind: input, shape index: {}]   ;;  %s440_s5 = inlined_call_operand.hbm [shape: f32[128,128], index: 5, kind: input, shape index: {}]   ;;  %s441_s6 = inlined_call_operand.hbm [shape: f32[1,128], index: 6, kind: input, shape index: {}]   ;;  %s442_s7 = inlined_call_operand.vmem [shape: f32[8,128], index: 7, kind: output, shape index: {}]  }
   0x1   :  { %13 = vsyncpa [#allocation5], 0  ;;  %s30_s26 = sshll.u32 %s436_s1, 4  ;;  %s31_s26 = int_to_ptr.hbm [resolvable:$true] %s30_s26 }
   0x2   :  { %14 = vsyncpa [#allocation8], 0  ;;  %s364_s27 = smov [#allocation4]   ;;  %s60_s8 = sshll.u32 %s440_s5, 4  ;;  %s61_s8 = int_to_ptr.hbm [resolvable:$true] %s60_s8 }
   0x3   :  { %s32_s28 = sshll.u32 %s364_s27, 4  ;;  %s365_s9 = smov 128   ;;  %s33_s28 = int_to_ptr.vmem [resolvable:$true] %s32_s28 }
   0x4   :  { %s366_s10 = smov 8   ;;  %s367_s11 = smov [#allocation7]  }
   0x5   :  { %38 = dma.hbm_to_vmem [thread:$0]  %s31_s26, 512, %s33_s28, [#allocation5], %s365_s9, %s365_s9, %s366_s10  }
   0x6   :  { %s62_s12 = sshll.u32 %s367_s11, 4  ;;  %s20_s15 = sshll.u32 %s435_s0, 4  ;;  %s63_s12 = int_to_ptr.vmem [resolvable:$true] %s62_s12  ;;  %s21_s15 = int_to_ptr.hbm [resolvable:$true] %s20_s15 }
   0x7   :  { %68 = dma.hbm_to_vmem [thread:$0]  %s61_s8, 2048, %s63_s12, [#allocation8], %s365_s9, %s365_s9, %s366_s10  }
   0x8   :  { %s45_s17 = sshll.u32 %s438_s3, 4  ;;  %s368_s18 = smov [#allocation2]   ;;  %s46_s17 = int_to_ptr.hbm [resolvable:$true] %s45_s17 }
   0x9   :  { %s22_s19 = sshll.u32 %s368_s18, 4  ;;  %s369_s5 = smov [#allocation6]   ;;  %s23_s19 = int_to_ptr.vmem [resolvable:$true] %s22_s19 }
   0xa   :  { %25 = dma.hbm_to_vmem [thread:$0]  %s21_s15, 128, %s23_s19, [#allocation3]  }
   0xb   :  { %s47_s20 = sshll.u32 %s369_s5, 4  ;;  %s74_s23 = sshll.u32 %s441_s6, 4  ;;  %s48_s20 = int_to_ptr.vmem [resolvable:$true] %s47_s20  ;;  %s75_s23 = int_to_ptr.hbm [resolvable:$true] %s74_s23 }
   0xc   :  { %53 = dma.hbm_to_vmem [thread:$0]  %s46_s17, 2048, %s48_s20, [#allocation5], %s365_s9, %s365_s9, %s366_s10  }
   0xd   :  { %s370_s0 = smov [#allocation9]  }
   0xe   :  { %s76_s24 = sshll.u32 %s370_s0, 4  ;;  %s77_s24 = int_to_ptr.vmem [resolvable:$true] %s76_s24 }
   0xf   :  { %79 = dma.hbm_to_vmem [thread:$0]  %s75_s23, 16, %s77_s24, [#allocation8]  }
  0x10   :  { %358 = dma.done.wait [#allocation3], 128  }
  0x11   :  { %359 = vsyncadd [#allocation3], 4294967168 }
  0x12   :  { %360 = dma.done.wait [#allocation5], 2560  }
  0x13   :  { %361 = vsyncadd [#allocation5], 4294964736 }
  0x14   :  { %362 = dma.done.wait [#allocation8], 2064  }
  0x15   :  { %363 = vsyncadd [#allocation8], 4294965232  ;;  %v104_v0 = vld [vmem:[#allocation4 + $0x18] sm:$0xff]  ;;  %v103_v1 = vld [vmem:[#allocation4 + $0x10] sm:$0xff]  ;;  %vm109_vm0 = vcmask 261120  }
  0x16   :  { %125 = vmatpush.msra.mxu0 %v104_v0  ;;  %v149_v2 = vld [vmem:[#allocation6 + $0x78] sm:$0xff]  ;;  %v102_v3 = vld [vmem:[#allocation4 + $0x8] sm:$0xff]  ;;  %v148_v4 = vld [vmem:[#allocation6 + $0x70] sm:$0xff] }
  0x17   :  { %154 = vmatpush.msra.mxu1 %v149_v2  ;;  %v147_v5 = vld [vmem:[#allocation6 + $0x68] sm:$0xff]  ;;  %v101_v6 = vld [vmem:[#allocation4] sm:$0xff]  ;;  %v100_v7 = vld [vmem:[#allocation2] sm:$0xff] }
  0x18   :  { %126 = vmatpush.msra.mxu0 %v103_v1  ;;  %v146_v8 = vld [vmem:[#allocation6 + $0x60] sm:$0xff]  ;;  %v145_v9 = vld [vmem:[#allocation6 + $0x58] sm:$0xff]  ;;  %v144_v10 = vld [vmem:[#allocation6 + $0x50] sm:$0xff] }
  0x19   :  { %155 = vmatpush.msra.mxu1 %v148_v4  ;;  %v143_v11 = vld [vmem:[#allocation6 + $0x48] sm:$0xff]  ;;  %v142_v12 = vld [vmem:[#allocation6 + $0x40] sm:$0xff]  ;;  %v141_v13 = vld [vmem:[#allocation6 + $0x38] sm:$0xff] }
  0x1a   :  { %127 = vmatpush.msra.mxu0 %v102_v3  ;;  %v140_v14 = vld [vmem:[#allocation6 + $0x30] sm:$0xff]  ;;  %v139_v15 = vld [vmem:[#allocation6 + $0x28] sm:$0xff]  ;;  %v138_v16 = vld [vmem:[#allocation6 + $0x20] sm:$0xff] }
  0x1b   :  { %156 = vmatpush.msra.mxu1 %v147_v5  ;;  %v137_v17 = vld [vmem:[#allocation6 + $0x18] sm:$0xff]  ;;  %v136_v18 = vld [vmem:[#allocation6 + $0x10] sm:$0xff]  ;;  %v135_v19 = vld [vmem:[#allocation6 + $0x8] sm:$0xff] }
  0x1c   :  { %128 = vmatpush.msra.mxu0 %v101_v6  ;;  %v134_v20 = vld [vmem:[#allocation6] sm:$0xff]  ;;  %v190_v21 = vld [vmem:[#allocation7 + $0x78] sm:$0xff]  ;;  %v189_v22 = vld [vmem:[#allocation7 + $0x70] sm:$0xff] }
  0x1d   :  { %223 = vmatmul.msk.f32.vlgmr.msra.gmra.mxu0 %vm109_vm0, %v100_v7  ;;  %157 = vmatpush.msra.mxu1 %v146_v8  ;;  %v188_v23 = vld [vmem:[#allocation7 + $0x68] sm:$0xff]  ;;  %v187_v24 = vld [vmem:[#allocation7 + $0x60] sm:$0xff]  ;;  %v186_v25 = vld [vmem:[#allocation7 + $0x58] sm:$0xff] }
  0x1e   :  { %195 = vmatpush.msra.mxu2 %v190_v21  ;;  %v185_v26 = vld [vmem:[#allocation7 + $0x50] sm:$0xff]  ;;  %v184_v27 = vld [vmem:[#allocation7 + $0x48] sm:$0xff]  ;;  %v183_v28 = vld [vmem:[#allocation7 + $0x40] sm:$0xff] }
  0x1f   :  { %158 = vmatpush.msra.mxu1 %v145_v9  ;;  %v182_v29 = vld [vmem:[#allocation7 + $0x38] sm:$0xff]  ;;  %v181_v30 = vld [vmem:[#allocation7 + $0x30] sm:$0xff]  ;;  %v180_v31 = vld [vmem:[#allocation7 + $0x28] sm:$0xff] }
  0x20   :  { %196 = vmatpush.msra.mxu2 %v189_v22  ;;  %v231_v32 = vld [vmem:[%s437_s2] ss:$0 sm:$0xff]  ;;  %v179_v36 = vld [vmem:[#allocation7 + $0x20] sm:$0xff]  ;;  %v177_v38 = vld [vmem:[#allocation7 + $0x10] sm:$0xff] }
  0x21   :  { %159 = vmatpush.msra.mxu1 %v144_v10  ;;  %v178_v37 = vld [vmem:[#allocation7 + $0x18] sm:$0xff]  ;;  %v176_v39 = vld [vmem:[#allocation7 + $0x8] sm:$0xff]  ;;  %v175_v40 = vld [vmem:[#allocation7] sm:$0xff] }
  0x22   :  { %197 = vmatpush.msra.mxu2 %v188_v23  ;;  %v232_v41 = vld [vmem:[%s439_s4] ss:$0 sm:$0xff]  ;;  %v233_v45 = vld [vmem:[#allocation9] ss:$0 sm:$0xff] }
  0x23   :  { %160 = vmatpush.msra.mxu1 %v143_v11 }
  0x24   :  { %198 = vmatpush.msra.mxu2 %v187_v24 }
  0x25   :  { %161 = vmatpush.msra.mxu1 %v142_v12 }
  0x26   :  { %199 = vmatpush.msra.mxu2 %v186_v25 }
  0x27   :  { %162 = vmatpush.msra.mxu1 %v141_v13 }
  0x28   :  { %200 = vmatpush.msra.mxu2 %v185_v26 }
  0x29   :  { %163 = vmatpush.msra.mxu1 %v140_v14 }
  0x2a   :  { %201 = vmatpush.msra.mxu2 %v184_v27 }
  0x2b   :  { %164 = vmatpush.msra.mxu1 %v139_v15 }
  0x2c   :  { %202 = vmatpush.msra.mxu2 %v183_v28 }
  0x2d   :  { %165 = vmatpush.msra.mxu1 %v138_v16 }
  0x2e   :  { %203 = vmatpush.msra.mxu2 %v182_v29 }
  0x2f   :  { %166 = vmatpush.msra.mxu1 %v137_v17 }
  0x30   :  { %204 = vmatpush.msra.mxu2 %v181_v30 }
  0x31   :  { %167 = vmatpush.msra.mxu1 %v136_v18 }
  0x32   :  { %205 = vmatpush.msra.mxu2 %v180_v31 }
  0x33   :  { %168 = vmatpush.msra.mxu1 %v135_v19 }
  0x34   :  { %206 = vmatpush.msra.mxu2 %v179_v36 }
  0x35   :  { %169 = vmatpush.msra.mxu1 %v134_v20 }
  0x36   :  { %207 = vmatpush.msra.mxu2 %v178_v37 }
  0x38   :  { %208 = vmatpush.msra.mxu2 %v177_v38 }
  0x3a   :  { %209 = vmatpush.msra.mxu2 %v176_v39 }
  0x3c   :  { %210 = vmatpush.msra.mxu2 %v175_v40 }
  0x9a   :  { %v130_v33 = vpop.f32.mrf.mxu0 }
  0x9b   :  { %v131_v34 = vadd.f32 %v231_v32, %v130_v33 }
  0x9d   :  { %234 = vtanh.f32 %v131_v34 }
  0xa3   :  { %v235_v35 = vpop.eup %234 }
  0xa4   :  { %170 = vmatmul.f32.vlgmr.msra.gmra.mxu1 %v235_v35 }
 0x121   :  { %v171_v42 = vpop.f32.mrf.mxu1 }
 0x122   :  { %v172_v43 = vadd.f32 %v232_v41, %v171_v42 }
 0x124   :  { %236 = vtanh.f32 %v172_v43 }
 0x12a   :  { %v237_v44 = vpop.eup %236 }
 0x12b   :  { %211 = vmatmul.f32.vlgmr.msra.gmra.mxu2 %v237_v44 }
 0x1ae   :  { %v212_v46 = vpop.f32.mrf.mxu2 }
 0x1af   :  { %v213_v47 = vadd.f32 %v233_v45, %v212_v46 }
 0x1b1   :  { %215 = vst [vmem:[%s442_s7] sm:$0xff] %v213_v47 }
 0x1b2   :  { %220 = vsyncpa [#allocation3], 1 }
 0x1b3   :  { %221 = vsyncpa [#allocation5], 1 }
 0x1b4   :  { %222 = vsyncpa [#allocation8], 1 }

</bundles_post_ra>
